<compile_context>
chip_gen: v6e
topology: v6e:2x2x1
jax: 0.10.0
libtpu: 0.0.40
codegen_flags: <defaults>
</compile_context>

<pallas_src>
import functools

import jax
import jax.numpy as jnp
import numpy as np
from jax.experimental import pallas as pl
from jax.experimental.pallas import tpu as pltpu


def _elu_plus_one(x):
    # elu(x) + 1 == where(x > 0, x + 1, exp(x)); clamp the exp argument so the
    # discarded branch never produces inf.
    return jnp.where(x > 0, x + 1.0, jnp.exp(jnp.minimum(x, 0.0)))


def linear_cross_attn_kernel(tgt_ref, mem_ref,
                             wq_ref, bq_ref, wk_ref, bk_ref,
                             wv_ref, bv_ref, wo_ref, bo_ref,
                             mask_ref,
                             out_ref, ctx_scratch,
                             *, matmul_dtype):
    # tgt_ref: (Bt, TL, D), mem_ref: (Bt, S, D)
    # weights are pre-transposed to (in, out) and already in matmul_dtype;
    # biases are (1, D) f32; mask_ref is the (D, D) block-diagonal head mask.
    Bt, TL, D = tgt_ref.shape
    S = mem_ref.shape[1]
    md = matmul_dtype
    ctx_dt = ctx_scratch.dtype

    # ---- K/V projections + per-batch context, cached across the l axis ----
    # ctx depends only on `memory`, so compute it once per batch tile
    # (pl.program_id(1) == 0) and reuse the VMEM-resident result for every
    # subsequent L tile of the same batch tile (l axis is "arbitrary"/last).
    @pl.when(pl.program_id(1) == 0)
    def _compute_ctx():
        xkv = mem_ref[...].reshape(Bt * S, D).astype(md)
        k = jnp.dot(xkv, wk_ref[...],
                    preferred_element_type=jnp.float32) + bk_ref[...]
        v = jnp.dot(xkv, wv_ref[...],
                    preferred_element_type=jnp.float32) + bv_ref[...]
        # Cast once (hoisted out of any per-batch work); v never needs f32 again.
        kp = _elu_plus_one(k).reshape(Bt, S, D).astype(md)
        vm = v.astype(md).reshape(Bt, S, D)
        # k'^T v per batch element, full D width; heads separated by the mask.
        ctx = jnp.einsum('bsd,bse->bde', kp, vm,
                         preferred_element_type=jnp.float32)
        ctx_scratch[...] = (ctx * mask_ref[...]).astype(ctx_dt)

    # ---- every step: q projection, linear attention, output projection ----
    xq = tgt_ref[...].reshape(Bt * TL, D).astype(md)
    q = jnp.dot(xq, wq_ref[...],
                preferred_element_type=jnp.float32) + bq_ref[...]
    qp = _elu_plus_one(q).reshape(Bt, TL, D).astype(ctx_dt)

    attn = jnp.einsum('bld,bde->ble', qp, ctx_scratch[...],
                      preferred_element_type=jnp.float32)

    attn2 = attn.reshape(Bt * TL, D).astype(md)
    out = jnp.dot(attn2, wo_ref[...],
                  preferred_element_type=jnp.float32) + bo_ref[...]
    out_ref[...] = out.reshape(Bt, TL, D).astype(out_ref.dtype)


def linear_cross_attention_batch_first(tgt_bld, mem_bsd, params, nhead, *,
                                       block_b=None, block_l=None,
                                       matmul_dtype=jnp.bfloat16,
                                       ctx_dtype=jnp.float32,
                                       vmem_limit_bytes=None):
    """Batch-first entry point: tgt (B, L, D), memory (B, S, D) -> (B, L, D).

    Prefer this entry when the surrounding model is batch-first: it avoids the
    three full HBM transposes the seq-first wrapper needs.  bf16 tgt/memory are
    accepted directly (halves the dominant HBM->VMEM streams; no wrapper cast).

    matmul_dtype : MXU input dtype (default bf16; f32 accumulation always).
    ctx_dtype    : dtype of the cached (D, D) context used by the q'@ctx GEMM.
                   Default f32 for accuracy (ctx grows ~O(S) and there is no
                   softmax normalizer); pass jnp.bfloat16 for full MXU throughput.
    block_b/block_l : tile sizes.  Aim for >= ~4 grid steps and Bt*TL >= 256
                   (v6e) / 128 (v5e); roughly halve the v6e tile on v7x (64 MiB
                   VMEM) and pass vmem_limit_bytes explicitly there.
    """
    B, L, D = tgt_bld.shape
    S = mem_bsd.shape[1]
    head_dim = D // nhead
    assert head_dim * nhead == D, "d_model must be divisible by nhead"

    Bt = B if block_b is None else block_b
    if block_l is None:
        # Heuristic: a few grid steps along L with a reasonably large M slab.
        TL = L
        for cand in (1024, 512, 256, 128, 64, 32, 16, 8):
            if cand < L and L % cand == 0 and Bt * cand >= 128:
                TL = cand
                break
    else:
        TL = block_l
    assert B % Bt == 0 and L % TL == 0, "block_b / block_l must divide B / L"
    # (8, 128) block constraint on the (Bt, TL, D) tiles: TL is the sublane dim.
    assert TL == L or TL % 8 == 0, "block_l must be a multiple of 8 or equal L"

    wq, bq, wk, bk, wv, bv, wo, bo = params
    # nn.Linear stores W as (out, in): y = x @ W^T + b.  Pre-transpose to
    # (in, out) and cast to the matmul dtype here so the weight DMA already
    # moves the narrow dtype.  Biases stay f32 (added after f32 accumulation).
    wq_t, wk_t, wv_t, wo_t = (w.T.astype(matmul_dtype) for w in (wq, wk, wv, wo))
    bq2, bk2, bv2, bo2 = (b.reshape(1, D).astype(jnp.float32)
                          for b in (bq, bk, bv, bo))

    # Block-diagonal head mask, precomputed once on the host and passed as a
    # grid-invariant input (no per-step iota/compare work in the kernel).
    hm = (np.arange(D)[:, None] // head_dim) == (np.arange(D)[None, :] // head_dim)
    head_mask = jnp.asarray(hm, dtype=jnp.float32)

    kernel = functools.partial(linear_cross_attn_kernel,
                               matmul_dtype=matmul_dtype)

    # Grid-invariant blocks (index_map always (0, 0)): single-buffer them so
    # they occupy VMEM exactly once instead of twice.
    invariant = pl.Buffered(1)
    w_spec = pl.BlockSpec((D, D), lambda b, l: (0, 0), pipeline_mode=invariant)
    b_spec = pl.BlockSpec((1, D), lambda b, l: (0, 0), pipeline_mode=invariant)
    m_spec = pl.BlockSpec((D, D), lambda b, l: (0, 0), pipeline_mode=invariant)

    grid = (B // Bt, L // TL)

    return pl.pallas_call(
        kernel,
        out_shape=jax.ShapeDtypeStruct((B, L, D), tgt_bld.dtype),
        grid=grid,
        in_specs=[
            pl.BlockSpec((Bt, TL, D), lambda b, l: (b, l, 0)),   # tgt
            pl.BlockSpec((Bt, S, D), lambda b, l: (b, 0, 0)),    # memory
            w_spec, b_spec,                                      # q_proj
            w_spec, b_spec,                                      # k_proj
            w_spec, b_spec,                                      # v_proj
            w_spec, b_spec,                                      # out_proj
            m_spec,                                              # head mask
        ],
        out_specs=pl.BlockSpec((Bt, TL, D), lambda b, l: (b, l, 0)),
        scratch_shapes=[pltpu.VMEM((Bt, D, D), ctx_dtype)],      # cached ctx
        compiler_params=pltpu.CompilerParams(
            # b is parallel (megacore / v7x 2-TC); l must be "arbitrary" and
            # last so the ctx cache sees the l steps of a batch tile in order.
            dimension_semantics=("parallel", "arbitrary"),
            vmem_limit_bytes=vmem_limit_bytes),
    )(tgt_bld, mem_bsd, wq_t, bq2, wk_t, bk2, wv_t, bv2, wo_t, bo2, head_mask)


def linear_cross_attention(tgt, memory, params, nhead, **kw):
    """PyTorch-compatible seq-first interface: tgt (L, B, D), memory (S, B, D).

    The transposes below are XLA HBM round-trips outside the kernel; for a
    batch-first model call linear_cross_attention_batch_first directly.
    """
    tgt_b = jnp.transpose(tgt, (1, 0, 2))      # (B, L, D)
    mem_b = jnp.transpose(memory, (1, 0, 2))   # (B, S, D)
    out_b = linear_cross_attention_batch_first(tgt_b, mem_b, params, nhead, **kw)
    return jnp.transpose(out_b, (1, 0, 2))     # back to (L, B, D)


def reference_jax(tgt, memory, params, nhead):
    """Pure-JAX reference mirroring the PyTorch forward exactly (f32)."""
    wq, bq, wk, bk, wv, bv, wo, bo = params
    L, B, D = tgt.shape
    S = memory.shape[0]
    hd = D // nhead

    q = tgt @ wq.T + bq          # (L, B, D)
    k = memory @ wk.T + bk       # (S, B, D)
    v = memory @ wv.T + bv       # (S, B, D)

    q = jnp.transpose(q, (1, 0, 2)).reshape(B, L, nhead, hd).transpose(0, 2, 1, 3)
    k = jnp.transpose(k, (1, 0, 2)).reshape(B, S, nhead, hd).transpose(0, 2, 1, 3)
    v = jnp.transpose(v, (1, 0, 2)).reshape(B, S, nhead, hd).transpose(0, 2, 1, 3)

    kp = jax.nn.elu(k) + 1.0
    qp = jax.nn.elu(q) + 1.0

    context = jnp.einsum('bhnd,bhne->bhde', kp, v)
    attn = jnp.einsum('bhnd,bhde->bhne', qp, context)       # (B, H, L, hd)
    attn = attn.transpose(0, 2, 1, 3).reshape(B, L, D)
    out = attn @ wo.T + bo                                   # (B, L, D)
    return jnp.transpose(out, (1, 0, 2))                     # (L, B, D)


def init_params(key, d_model):
    """Deterministic init matching nn.Linear shapes: W (out,in), b (out,)."""
    bound = 1.0 / np.sqrt(d_model)
    keys = jax.random.split(key, 8)
    params = []
    for i in range(4):
        w = jax.random.uniform(keys[2 * i], (d_model, d_model),
                               minval=-bound, maxval=bound, dtype=jnp.float32)
        b = jax.random.uniform(keys[2 * i + 1], (d_model,),
                               minval=-bound, maxval=bound, dtype=jnp.float32)
        params += [w, b]
    return tuple(params)


if __name__ == "__main__":
    d_model, nhead = 32, 4
    key = jax.random.PRNGKey(0)
    k1, k2, k3, k4, k5 = jax.random.split(key, 5)
    params = init_params(k3, d_model)

    # Case 1: default path (bf16 MXU, f32 ctx), single grid step.
    L, S, B = 8, 16, 2
    tgt = jax.random.normal(k1, (L, B, d_model), dtype=jnp.float32)
    mem = jax.random.normal(k2, (S, B, d_model), dtype=jnp.float32)
    ref = jax.block_until_ready(reference_jax(tgt, mem, params, nhead))
    out = jax.block_until_ready(linear_cross_attention(tgt, mem, params, nhead))
    assert out.shape == (L, B, d_model), out.shape
    scale = float(np.max(np.abs(np.asarray(ref))))
    err = float(np.max(np.abs(np.asarray(out) - np.asarray(ref))))
    assert err <= 5e-2 * scale, (err, scale)

    # Case 2: f32 matmuls, 2-D grid (2 batch tiles x 2 L tiles) exercising the
    # cached-ctx path across l steps and the ctx recompute on batch-tile change.
    L2, S2, B2 = 16, 16, 4
    tgt2 = jax.random.normal(k4, (L2, B2, d_model), dtype=jnp.float32)
    mem2 = jax.random.normal(k5, (S2, B2, d_model), dtype=jnp.float32)
    ref2 = jax.block_until_ready(reference_jax(tgt2, mem2, params, nhead))
    out2 = jax.block_until_ready(linear_cross_attention(
        tgt2, mem2, params, nhead, block_b=2, block_l=8,
        matmul_dtype=jnp.float32, ctx_dtype=jnp.float32))
    np.testing.assert_allclose(np.asarray(out2), np.asarray(ref2),
                               rtol=2e-3, atol=2e-3)

    # Case 3: full-throughput bf16 path (ctx in bf16 too), looser check.
    out3 = jax.block_until_ready(linear_cross_attention(
        tgt2, mem2, params, nhead, block_b=2, block_l=8,
        matmul_dtype=jnp.bfloat16, ctx_dtype=jnp.bfloat16))
    scale3 = float(np.max(np.abs(np.asarray(ref2))))
    err3 = float(np.max(np.abs(np.asarray(out3) - np.asarray(ref2))))
    assert err3 <= 1e-1 * scale3, (err3, scale3)

    print("KERNEL_OK")
</pallas_src>

<mosaic_0001>
module attributes {stable_mosaic.version = 11 : i64} {
  func.func @linear_cross_attn_kernel(%arg0: i32, %arg1: i32, %arg2: memref<2x8x32xf32, #tpu.memory_space<vmem>>, %arg3: memref<2x16x32xf32, #tpu.memory_space<vmem>>, %arg4: memref<32x32xbf16, #tpu.memory_space<vmem>>, %arg5: memref<1x32xf32, #tpu.memory_space<vmem>>, %arg6: memref<32x32xbf16, #tpu.memory_space<vmem>>, %arg7: memref<1x32xf32, #tpu.memory_space<vmem>>, %arg8: memref<32x32xbf16, #tpu.memory_space<vmem>>, %arg9: memref<1x32xf32, #tpu.memory_space<vmem>>, %arg10: memref<32x32xbf16, #tpu.memory_space<vmem>>, %arg11: memref<1x32xf32, #tpu.memory_space<vmem>>, %arg12: memref<32x32xf32, #tpu.memory_space<vmem>>, %arg13: memref<2x8x32xf32, #tpu.memory_space<vmem>>, %arg14: memref<2x32x32xf32, #tpu.memory_space<vmem>>) attributes {dimension_semantics = [#tpu.dimension_semantics<parallel>, #tpu.dimension_semantics<arbitrary>], iteration_bounds = array<i64: 1, 1>, scalar_prefetch = 0 : i64, scratch_operands = 1 : i64, tpu.core_type = #tpu.core_type<tc>, window_params = [{transform_indices = @transform_0, window_bounds = array<i64: 2, 8, 32>}, {transform_indices = @transform_1, window_bounds = array<i64: 2, 16, 32>}, {pipeline_mode = #tpu.pipeline_mode<synchronous>, transform_indices = @transform_2, window_bounds = array<i64: 32, 32>}, {pipeline_mode = #tpu.pipeline_mode<synchronous>, transform_indices = @transform_3, window_bounds = array<i64: 1, 32>}, {pipeline_mode = #tpu.pipeline_mode<synchronous>, transform_indices = @transform_4, window_bounds = array<i64: 32, 32>}, {pipeline_mode = #tpu.pipeline_mode<synchronous>, transform_indices = @transform_5, window_bounds = array<i64: 1, 32>}, {pipeline_mode = #tpu.pipeline_mode<synchronous>, transform_indices = @transform_6, window_bounds = array<i64: 32, 32>}, {pipeline_mode = #tpu.pipeline_mode<synchronous>, transform_indices = @transform_7, window_bounds = array<i64: 1, 32>}, {pipeline_mode = #tpu.pipeline_mode<synchronous>, transform_indices = @transform_8, window_bounds = array<i64: 32, 32>}, {pipeline_mode = #tpu.pipeline_mode<synchronous>, transform_indices = @transform_9, window_bounds = array<i64: 1, 32>}, {pipeline_mode = #tpu.pipeline_mode<synchronous>, transform_indices = @transform_10, window_bounds = array<i64: 32, 32>}, {transform_indices = @transform_11, window_bounds = array<i64: 2, 8, 32>}]} {
    %c0_i32 = arith.constant 0 : i32
    %0 = arith.cmpi eq, %arg1, %c0_i32 : i32
    %1 = arith.extui %0 : i1 to i32
    %c0_i32_0 = arith.constant 0 : i32
    %2 = arith.cmpi ne, %1, %c0_i32_0 : i32
    scf.if %2 {
      %c0_22 = arith.constant 0 : index
      %c0_23 = arith.constant 0 : index
      %c0_24 = arith.constant 0 : index
      %31 = vector.load %arg3[%c0_22, %c0_23, %c0_24] : memref<2x16x32xf32, #tpu.memory_space<vmem>>, vector<2x16x32xf32>
      %32 = vector.shape_cast %31 : vector<2x16x32xf32> to vector<32x32xf32>
      %33 = arith.truncf %32 : vector<32x32xf32> to vector<32x32xbf16>
      %c0_25 = arith.constant 0 : index
      %c0_26 = arith.constant 0 : index
      %34 = vector.load %arg6[%c0_25, %c0_26] : memref<32x32xbf16, #tpu.memory_space<vmem>>, vector<32x32xbf16>
      %cst_27 = arith.constant dense<0.000000e+00> : vector<32x32xf32>
      %35 = tpu.matmul %33, %34, %cst_27 {dimension_numbers = #tpu.dot_dimension_numbers<[1], [0], [0], [1], [0, 0, 1, 1], [], []>} : vector<32x32xbf16>, vector<32x32xbf16>, vector<32x32xf32> -> vector<32x32xf32>
      %c0_28 = arith.constant 0 : index
      %c0_29 = arith.constant 0 : index
      %36 = vector.load %arg7[%c0_28, %c0_29] : memref<1x32xf32, #tpu.memory_space<vmem>>, vector<1x32xf32>
      %37 = vector.broadcast %36 : vector<1x32xf32> to vector<32x32xf32>
      %38 = arith.addf %35, %37 : vector<32x32xf32>
      %c0_30 = arith.constant 0 : index
      %c0_31 = arith.constant 0 : index
      %39 = vector.load %arg8[%c0_30, %c0_31] : memref<32x32xbf16, #tpu.memory_space<vmem>>, vector<32x32xbf16>
      %cst_32 = arith.constant dense<0.000000e+00> : vector<32x32xf32>
      %40 = tpu.matmul %33, %39, %cst_32 {dimension_numbers = #tpu.dot_dimension_numbers<[1], [0], [0], [1], [0, 0, 1, 1], [], []>} : vector<32x32xbf16>, vector<32x32xbf16>, vector<32x32xf32> -> vector<32x32xf32>
      %c0_33 = arith.constant 0 : index
      %c0_34 = arith.constant 0 : index
      %41 = vector.load %arg9[%c0_33, %c0_34] : memref<1x32xf32, #tpu.memory_space<vmem>>, vector<1x32xf32>
      %42 = vector.broadcast %41 : vector<1x32xf32> to vector<32x32xf32>
      %43 = arith.addf %40, %42 : vector<32x32xf32>
      %cst_35 = arith.constant 0.000000e+00 : f32
      %44 = vector.broadcast %cst_35 : f32 to vector<32x32xf32>
      %45 = arith.cmpf ogt, %38, %44 : vector<32x32xf32>
      %cst_36 = arith.constant 1.000000e+00 : f32
      %46 = vector.broadcast %cst_36 : f32 to vector<32x32xf32>
      %47 = arith.addf %38, %46 : vector<32x32xf32>
      %cst_37 = arith.constant 0.000000e+00 : f32
      %48 = vector.broadcast %cst_37 : f32 to vector<32x32xf32>
      %49 = arith.minimumf %38, %48 : vector<32x32xf32>
      %50 = math.exp %49 : vector<32x32xf32>
      %51 = arith.select %45, %47, %50 : vector<32x32xi1>, vector<32x32xf32>
      %52 = vector.shape_cast %51 : vector<32x32xf32> to vector<2x16x32xf32>
      %53 = arith.truncf %52 : vector<2x16x32xf32> to vector<2x16x32xbf16>
      %54 = arith.truncf %43 : vector<32x32xf32> to vector<32x32xbf16>
      %55 = vector.shape_cast %54 : vector<32x32xbf16> to vector<2x16x32xbf16>
      "tpu.trace_start"() <{level = 10 : i32, message = "bsd,bse->bde"}> : () -> ()
      %cst_38 = arith.constant dense<0.000000e+00> : vector<2x32x32xf32>
      %56 = tpu.matmul %53, %55, %cst_38 {dimension_numbers = #tpu.dot_dimension_numbers<[1], [1], [2], [2], [0, 0, 0, 2, 1, 2], [0], [0]>} : vector<2x16x32xbf16>, vector<2x16x32xbf16>, vector<2x32x32xf32> -> vector<2x32x32xf32>
      "tpu.trace_stop"() : () -> ()
      %c0_39 = arith.constant 0 : index
      %c0_40 = arith.constant 0 : index
      %57 = vector.load %arg12[%c0_39, %c0_40] : memref<32x32xf32, #tpu.memory_space<vmem>>, vector<32x32xf32>
      %58 = vector.shape_cast %57 : vector<32x32xf32> to vector<1x32x32xf32>
      %59 = vector.broadcast %58 : vector<1x32x32xf32> to vector<2x32x32xf32>
      %60 = arith.mulf %56, %59 : vector<2x32x32xf32>
      %c0_41 = arith.constant 0 : index
      %c0_42 = arith.constant 0 : index
      %c0_43 = arith.constant 0 : index
      %61 = vector.load %arg14[%c0_41, %c0_42, %c0_43] : memref<2x32x32xf32, #tpu.memory_space<vmem>>, vector<2x32x32xf32>
      tpu.vector_store %arg14[%c0_41, %c0_42, %c0_43], %60 {strides = array<i32>} : memref<2x32x32xf32, #tpu.memory_space<vmem>>, vector<2x32x32xf32>,
    } else {
    }
    %c0 = arith.constant 0 : index
    %c0_1 = arith.constant 0 : index
    %c0_2 = arith.constant 0 : index
    %3 = vector.load %arg2[%c0, %c0_1, %c0_2] : memref<2x8x32xf32, #tpu.memory_space<vmem>>, vector<2x8x32xf32>
    %4 = vector.shape_cast %3 : vector<2x8x32xf32> to vector<16x32xf32>
    %5 = arith.truncf %4 : vector<16x32xf32> to vector<16x32xbf16>
    %c0_3 = arith.constant 0 : index
    %c0_4 = arith.constant 0 : index
    %6 = vector.load %arg4[%c0_3, %c0_4] : memref<32x32xbf16, #tpu.memory_space<vmem>>, vector<32x32xbf16>
    %cst = arith.constant dense<0.000000e+00> : vector<16x32xf32>
    %7 = tpu.matmul %5, %6, %cst {dimension_numbers = #tpu.dot_dimension_numbers<[1], [0], [0], [1], [0, 0, 1, 1], [], []>} : vector<16x32xbf16>, vector<32x32xbf16>, vector<16x32xf32> -> vector<16x32xf32>
    %c0_5 = arith.constant 0 : index
    %c0_6 = arith.constant 0 : index
    %8 = vector.load %arg5[%c0_5, %c0_6] : memref<1x32xf32, #tpu.memory_space<vmem>>, vector<1x32xf32>
    %9 = vector.broadcast %8 : vector<1x32xf32> to vector<16x32xf32>
    %10 = arith.addf %7, %9 : vector<16x32xf32>
    %cst_7 = arith.constant 0.000000e+00 : f32
    %11 = vector.broadcast %cst_7 : f32 to vector<16x32xf32>
    %12 = arith.cmpf ogt, %10, %11 : vector<16x32xf32>
    %cst_8 = arith.constant 1.000000e+00 : f32
    %13 = vector.broadcast %cst_8 : f32 to vector<16x32xf32>
    %14 = arith.addf %10, %13 : vector<16x32xf32>
    %cst_9 = arith.constant 0.000000e+00 : f32
    %15 = vector.broadcast %cst_9 : f32 to vector<16x32xf32>
    %16 = arith.minimumf %10, %15 : vector<16x32xf32>
    %17 = math.exp %16 : vector<16x32xf32>
    %18 = arith.select %12, %14, %17 : vector<16x32xi1>, vector<16x32xf32>
    %19 = vector.shape_cast %18 : vector<16x32xf32> to vector<2x8x32xf32>
    %c0_10 = arith.constant 0 : index
    %c0_11 = arith.constant 0 : index
    %c0_12 = arith.constant 0 : index
    %20 = vector.load %arg14[%c0_10, %c0_11, %c0_12] : memref<2x32x32xf32, #tpu.memory_space<vmem>>, vector<2x32x32xf32>
    "tpu.trace_start"() <{level = 10 : i32, message = "bld,bde->ble"}> : () -> ()
    %cst_13 = arith.constant dense<0.000000e+00> : vector<2x8x32xf32>
    %21 = tpu.matmul %19, %20, %cst_13 {dimension_numbers = #tpu.dot_dimension_numbers<[2], [1], [1], [2], [0, 0, 0, 1, 1, 2], [0], [0]>} : vector<2x8x32xf32>, vector<2x32x32xf32>, vector<2x8x32xf32> -> vector<2x8x32xf32>
    "tpu.trace_stop"() : () -> ()
    %22 = vector.shape_cast %21 : vector<2x8x32xf32> to vector<16x32xf32>
    %23 = arith.truncf %22 : vector<16x32xf32> to vector<16x32xbf16>
    %c0_14 = arith.constant 0 : index
    %c0_15 = arith.constant 0 : index
    %24 = vector.load %arg10[%c0_14, %c0_15] : memref<32x32xbf16, #tpu.memory_space<vmem>>, vector<32x32xbf16>
    %cst_16 = arith.constant dense<0.000000e+00> : vector<16x32xf32>
    %25 = tpu.matmul %23, %24, %cst_16 {dimension_numbers = #tpu.dot_dimension_numbers<[1], [0], [0], [1], [0, 0, 1, 1], [], []>} : vector<16x32xbf16>, vector<32x32xbf16>, vector<16x32xf32> -> vector<16x32xf32>
    %c0_17 = arith.constant 0 : index
    %c0_18 = arith.constant 0 : index
    %26 = vector.load %arg11[%c0_17, %c0_18] : memref<1x32xf32, #tpu.memory_space<vmem>>, vector<1x32xf32>
    %27 = vector.broadcast %26 : vector<1x32xf32> to vector<16x32xf32>
    %28 = arith.addf %25, %27 : vector<16x32xf32>
    %29 = vector.shape_cast %28 : vector<16x32xf32> to vector<2x8x32xf32>
    %c0_19 = arith.constant 0 : index
    %c0_20 = arith.constant 0 : index
    %c0_21 = arith.constant 0 : index
    %30 = vector.load %arg13[%c0_19, %c0_20, %c0_21] : memref<2x8x32xf32, #tpu.memory_space<vmem>>, vector<2x8x32xf32>
    tpu.vector_store %arg13[%c0_19, %c0_20, %c0_21], %29 {strides = array<i32>} : memref<2x8x32xf32, #tpu.memory_space<vmem>>, vector<2x8x32xf32>,
    return
  }
  func.func @transform_0(%arg0: i32, %arg1: i32) -> (i32, i32, i32) {
    %c0_i32 = arith.constant 0 : i32
    %c0_i32_0 = arith.constant 0 : i32
    return %arg0, %arg1, %c0_i32 : i32, i32, i32
  }
  func.func @transform_1(%arg0: i32, %arg1: i32) -> (i32, i32, i32) {
    %c0_i32 = arith.constant 0 : i32
    %c0_i32_0 = arith.constant 0 : i32
    %c0_i32_1 = arith.constant 0 : i32
    return %arg0, %c0_i32, %c0_i32_0 : i32, i32, i32
  }
  func.func @transform_2(%arg0: i32, %arg1: i32) -> (i32, i32) {
    %c0_i32 = arith.constant 0 : i32
    %c0_i32_0 = arith.constant 0 : i32
    %c0_i32_1 = arith.constant 0 : i32
    return %c0_i32, %c0_i32_0 : i32, i32
  }
  func.func @transform_3(%arg0: i32, %arg1: i32) -> (i32, i32) {
    %c0_i32 = arith.constant 0 : i32
    %c0_i32_0 = arith.constant 0 : i32
    %c0_i32_1 = arith.constant 0 : i32
    return %c0_i32, %c0_i32_0 : i32, i32
  }
  func.func @transform_4(%arg0: i32, %arg1: i32) -> (i32, i32) {
    %c0_i32 = arith.constant 0 : i32
    %c0_i32_0 = arith.constant 0 : i32
    %c0_i32_1 = arith.constant 0 : i32
    return %c0_i32, %c0_i32_0 : i32, i32
  }
  func.func @transform_5(%arg0: i32, %arg1: i32) -> (i32, i32) {
    %c0_i32 = arith.constant 0 : i32
    %c0_i32_0 = arith.constant 0 : i32
    %c0_i32_1 = arith.constant 0 : i32
    return %c0_i32, %c0_i32_0 : i32, i32
  }
  func.func @transform_6(%arg0: i32, %arg1: i32) -> (i32, i32) {
    %c0_i32 = arith.constant 0 : i32
    %c0_i32_0 = arith.constant 0 : i32
    %c0_i32_1 = arith.constant 0 : i32
    return %c0_i32, %c0_i32_0 : i32, i32
  }
  func.func @transform_7(%arg0: i32, %arg1: i32) -> (i32, i32) {
    %c0_i32 = arith.constant 0 : i32
    %c0_i32_0 = arith.constant 0 : i32
    %c0_i32_1 = arith.constant 0 : i32
    return %c0_i32, %c0_i32_0 : i32, i32
  }
  func.func @transform_8(%arg0: i32, %arg1: i32) -> (i32, i32) {
    %c0_i32 = arith.constant 0 : i32
    %c0_i32_0 = arith.constant 0 : i32
    %c0_i32_1 = arith.constant 0 : i32
    return %c0_i32, %c0_i32_0 : i32, i32
  }
  func.func @transform_9(%arg0: i32, %arg1: i32) -> (i32, i32) {
    %c0_i32 = arith.constant 0 : i32
    %c0_i32_0 = arith.constant 0 : i32
    %c0_i32_1 = arith.constant 0 : i32
    return %c0_i32, %c0_i32_0 : i32, i32
  }
  func.func @transform_10(%arg0: i32, %arg1: i32) -> (i32, i32) {
    %c0_i32 = arith.constant 0 : i32
    %c0_i32_0 = arith.constant 0 : i32
    %c0_i32_1 = arith.constant 0 : i32
    return %c0_i32, %c0_i32_0 : i32, i32
  }
  func.func @transform_11(%arg0: i32, %arg1: i32) -> (i32, i32, i32) {
    %c0_i32 = arith.constant 0 : i32
    %c0_i32_0 = arith.constant 0 : i32
    return %arg0, %arg1, %c0_i32 : i32, i32, i32
  }
}

</mosaic_0001>

<bundles_post_ra>
// kernel: tpu_custom_call.1
= control target key start
LH: loop header
LB: loop body
LE: loop exit
PB: predicated region body
PF: predicated region fallthrough
CT: control target
= control target key end

     0   :  { %16 = vsyncpa [#allocation4], 0  ;;  %s1315_s0 = inlined_call_operand.hbm [shape: f32[2,8,32], index: 0, kind: input, shape index: {}]   ;;  %s1316_s1 = inlined_call_operand.hbm [shape: f32[2,16,32], index: 1, kind: input, shape index: {}]   ;;  %s1317_s2 = inlined_call_operand.hbm [shape: bf16[32,32], index: 2, kind: input, shape index: {}]   ;;  %s1318_s3 = inlined_call_operand.vmem [shape: f32[1,32], index: 3, kind: input, shape index: {}]   ;;  %s1319_s4 = inlined_call_operand.hbm [shape: bf16[32,32], index: 4, kind: input, shape index: {}]   ;;  %s1320_s5 = inlined_call_operand.vmem [shape: f32[1,32], index: 5, kind: input, shape index: {}]   ;;  %s1321_s6 = inlined_call_operand.hbm [shape: bf16[32,32], index: 6, kind: input, shape index: {}]   ;;  %s1322_s7 = inlined_call_operand.vmem [shape: f32[1,32], index: 7, kind: input, shape index: {}]   ;;  %s1323_s8 = inlined_call_operand.hbm [shape: bf16[32,32], index: 8, kind: input, shape index: {}]   ;;  %s1324_s9 = inlined_call_operand.vmem [shape: f32[1,32], index: 9, kind: input, shape index: {}]   ;;  %s1325_s10 = inlined_call_operand.hbm [shape: f32[32,32], index: 10, kind: input, shape index: {}]   ;;  %s1326_s11 = inlined_call_operand.hbm [shape: f32[2,8,32], index: 11, kind: output, shape index: {}]  }
   0x1   :  { %17 = vsyncpa [#allocation7], 0 }
   0x2   :  { %18 = vsyncpa [#allocation10], 0 }
   0x3   :  { %19 = vsyncpa [#allocation13], 0 }
   0x4   :  { %20 = vsyncpa [#allocation5], 0  ;;  %s1139_s17 = smov [#allocation6]  }
   0x5   :  { %s38_s18 = sshll.u32 %s1139_s17, 4  ;;  %s39_s18 = int_to_ptr.vmem [resolvable:$true] %s38_s18 }
   0x6   :  { %s977_s19 = scalar_lea.vmem %s39_s18, 512  ;;  %p982_p1 = scmp.lt.s32.totalorder %s39_s18, %s39_s18 }
   0x7   :  { %p978_p0 = scmp.ne.s32.totalorder %s39_s18, %s977_s19  ;;  %p983_p2 = scmp.lt.s32.totalorder %s977_s19, %s977_s19 }
   0x9   :  { %p984_p3 = por %p983_p2, %p982_p1 }
   0xb   :  { %p985_p4 = pnand %p984_p3, %p978_p0 }
   0xd   :  { %988 = shalt.err (!%p985_p4)
}
   0xe   :  { %s1140_s20 = smov 128   ;;  %s1141_s21 = smov 8  }
   0xf   :  { %44 = dma.hbm_to_vmem [thread:$0]  %s1316_s1, 512, %s39_s18, [#allocation7], %s1140_s20, %s1140_s20, %s1141_s21  }
  0x10   :  { %s1142_s24 = smov [#allocation9]   ;;  %s1143_s26 = smov [#allocation12]  }
  0x11   :  { %s64_s25 = sshll.u32 %s1142_s24, 4  ;;  %s92_s27 = sshll.u32 %s1143_s26, 4  ;;  %s65_s25 = int_to_ptr.vmem [resolvable:$true] %s64_s25  ;;  %s93_s27 = int_to_ptr.vmem [resolvable:$true] %s92_s27 }
  0x12   :  { %s997_s28 = scalar_lea.vmem %s65_s25, 256  ;;  %p1002_p6 = scmp.lt.s32.totalorder %s65_s25, %s65_s25 }
  0x13   :  { %p998_p5 = scmp.ne.s32.totalorder %s65_s25, %s997_s28  ;;  %p1003_p7 = scmp.lt.s32.totalorder %s997_s28, %s997_s28 }
  0x15   :  { %p1004_p8 = por %p1003_p7, %p1002_p6 }
  0x17   :  { %p1005_p9 = pnand %p1004_p8, %p998_p5 }
  0x19   :  { %1008 = shalt.err (!%p1005_p9)
}
  0x1a   :  { %s1144_s29 = smov 64   ;;  %s1145_s30 = smov 4  }
  0x1b   :  { %70 = dma.hbm_to_vmem [thread:$0]  %s1319_s4, 256, %s65_s25, [#allocation10], %s1144_s29, %s1144_s29, %s1145_s30  }
  0x1c   :  { %s1017_s1 = scalar_lea.vmem %s93_s27, 256  ;;  %p1022_p11 = scmp.lt.s32.totalorder %s93_s27, %s93_s27 }
  0x1d   :  { %p1018_p10 = scmp.ne.s32.totalorder %s93_s27, %s1017_s1  ;;  %p1023_p12 = scmp.lt.s32.totalorder %s1017_s1, %s1017_s1 }
  0x1f   :  { %p1024_p13 = por %p1023_p12, %p1022_p11 }
  0x21   :  { %p1025_p0 = pnand %p1024_p13, %p1018_p10 }
  0x23   :  { %1028 = shalt.err (!%p1025_p0)
}
  0x24   :  { %98 = dma.hbm_to_vmem [thread:$0]  %s1323_s8, 256, %s93_s27, [#allocation13], %s1144_s29, %s1144_s29, %s1145_s30  }
  0x25   :  { %s1146_s16 = smov [#allocation3]   ;;  %s1147_s18 = smov [#allocation8]  }
  0x26   :  { %s26_s17 = sshll.u32 %s1146_s16, 4  ;;  %s50_s4 = sshll.u32 %s1147_s18, 4  ;;  %s27_s17 = int_to_ptr.vmem [resolvable:$true] %s26_s17  ;;  %s51_s4 = int_to_ptr.vmem [resolvable:$true] %s50_s4 }
  0x27   :  { %s1037_s19 = scalar_lea.vmem %s27_s17, 256  ;;  %p1042_p2 = scmp.lt.s32.totalorder %s27_s17, %s27_s17 }
  0x28   :  { %p1038_p1 = scmp.ne.s32.totalorder %s27_s17, %s1037_s19  ;;  %p1043_p3 = scmp.lt.s32.totalorder %s1037_s19, %s1037_s19 }
  0x2a   :  { %p1044_p4 = por %p1043_p3, %p1042_p2 }
  0x2c   :  { %p1045_p5 = pnand %p1044_p4, %p1038_p1 }
  0x2e   :  { %1048 = shalt.err (!%p1045_p5)
}
  0x2f   :  { %32 = dma.hbm_to_vmem [thread:$0]  %s1315_s0, 256, %s27_s17, [#allocation4], %s1140_s20, %s1140_s20, %s1141_s21  }
  0x30   :  { %s1057_s8 = scalar_lea.vmem %s51_s4, 256  ;;  %p1062_p7 = scmp.lt.s32.totalorder %s51_s4, %s51_s4 }
  0x31   :  { %p1058_p6 = scmp.ne.s32.totalorder %s51_s4, %s1057_s8  ;;  %p1063_p8 = scmp.lt.s32.totalorder %s1057_s8, %s1057_s8 }
  0x33   :  { %p1064_p9 = por %p1063_p8, %p1062_p7 }
  0x35   :  { %p1065_p10 = pnand %p1064_p9, %p1058_p6 }
  0x37   :  { %1068 = shalt.err (!%p1065_p10)
}
  0x38   :  { %56 = dma.hbm_to_vmem [thread:$0]  %s1317_s2, 256, %s51_s4, [#allocation7], %s1144_s29, %s1144_s29, %s1145_s30  }
  0x39   :  { %s1148_s26 = smov [#allocation11]   ;;  %s1149_s28 = smov [#allocation14]  }
  0x3a   :  { %s78_s27 = sshll.u32 %s1148_s26, 4  ;;  %s106_s0 = sshll.u32 %s1149_s28, 4  ;;  %s79_s27 = int_to_ptr.vmem [resolvable:$true] %s78_s27  ;;  %s107_s0 = int_to_ptr.vmem [resolvable:$true] %s106_s0 }
  0x3b   :  { %s1077_s12 = scalar_lea.vmem %s79_s27, 256  ;;  %p1082_p12 = scmp.lt.s32.totalorder %s79_s27, %s79_s27 }
  0x3c   :  { %p1078_p11 = scmp.ne.s32.totalorder %s79_s27, %s1077_s12  ;;  %p1083_p13 = scmp.lt.s32.totalorder %s1077_s12, %s1077_s12 }
  0x3e   :  { %p1084_p0 = por %p1083_p13, %p1082_p12 }
  0x40   :  { %p1085_p1 = pnand %p1084_p0, %p1078_p11 }
  0x42   :  { %1088 = shalt.err (!%p1085_p1)
}
  0x43   :  { %84 = dma.hbm_to_vmem [thread:$0]  %s1321_s6, 256, %s79_s27, [#allocation10], %s1144_s29, %s1144_s29, %s1145_s30  }
  0x44   :  { %s1097_s2 = scalar_lea.vmem %s107_s0, 512  ;;  %p1102_p3 = scmp.lt.s32.totalorder %s107_s0, %s107_s0 }
  0x45   :  { %p1098_p2 = scmp.ne.s32.totalorder %s107_s0, %s1097_s2  ;;  %p1103_p4 = scmp.lt.s32.totalorder %s1097_s2, %s1097_s2 }
  0x47   :  { %p1104_p5 = por %p1103_p4, %p1102_p3 }
  0x49   :  { %p1105_p6 = pnand %p1104_p5, %p1098_p2 }
  0x4b   :  { %1108 = shalt.err (!%p1105_p6)
}
  0x4c   :  { %112 = dma.hbm_to_vmem [thread:$0]  %s1325_s10, 512, %s107_s0, [#allocation13], %s1140_s20, %s1140_s20, %s1141_s21  }
  0x4d   :  { %1129 = dma.done.wait [#allocation4], 256  }
  0x4e   :  { %1130 = vsyncadd [#allocation4], 4294967040 }
  0x4f   :  { %1131 = dma.done.wait [#allocation7], 768  }
  0x50   :  { %1132 = vsyncadd [#allocation7], 4294966528 }
  0x51   :  { %1133 = dma.done.wait [#allocation10], 512  }
  0x52   :  { %1134 = vsyncadd [#allocation10], 4294966784 }
  0x53   :  { %1135 = dma.done.wait [#allocation13], 768  }
  0x54   :  { %1136 = vsyncadd [#allocation13], 4294966528  ;;  %v949_v0 = vld [vmem:[#allocation9 + $0x8] sm:$0xff]   ;;  %v950_v1 = vld [vmem:[#allocation9] sm:$0xff]   ;;  %vm168_vm0 = vcmask 261120   ;;  %v1150_v38 = vmov 0.0  }
  0x55   :  { %868 = vmatprep.subr.bf16.mxu0 %v949_v0  ;;  %v139_v2 = vld [vmem:[#allocation6] sm:$0xff]  ;;  %v140_v3 = vld [vmem:[#allocation6 + $0x8] sm:$0xff]  ;;  %v141_v4 = vld [vmem:[#allocation6 + $0x10] sm:$0xff]  ;;  %vm340_vm5 = vcmask 130048   ;;  %vm1151_vm6 = vmmov 0   ;;  %s1152_s17 = smov [#allocation15]  }
  0x56   :  { %869 = vmatpush3.bf16.msra.mxu0 %v949_v0  ;;  %v143_v5 = vpack.c.bf16 %v140_v3, %v139_v2  ;;  %v142_v6 = vld [vmem:[#allocation6 + $0x18] sm:$0xff]  ;;  %v951_v7 = vld [vmem:[#allocation11 + $0x8] sm:$0xff]   ;;  %v952_v8 = vld [vmem:[#allocation11] sm:$0xff]   ;;  %s799_s18 = sshll.u32 %s1152_s17, 4  ;;  %s800_s18 = int_to_ptr.vmem [resolvable:$true] %s799_s18 }
  0x57   :  { %870 = vmatprep.subr.bf16.mxu0 %v950_v1  ;;  %v144_v9 = vpack.c.bf16 %v142_v6, %v141_v4  ;;  %876 = vmatprep.subr.bf16.mxu1 %v951_v7  ;;  %v814_v11 = vld [vmem:[%s1320_s5] ss:$0 sm:$0xff]  ;;  %v953_v54 = vld [vmem:[#allocation8 + $0x8] sm:$0xff]   ;;  %v954_v56 = vld [vmem:[#allocation8] sm:$0xff]   ;;  %s1109_s4 = scalar_lea.vmem %s800_s18, 256  ;;  %p1114_p8 = scmp.lt.s32.totalorder %s800_s18, %s800_s18 }
  0x58   :  { %872 = vmatprep.mubr.msk.bf16.mxu0 %vm168_vm0, %v143_v5  ;;  %880 = vmatprep.mubr.msk.bf16.mxu1 %vm168_vm0, %v143_v5  ;;  %v819_v16 = vld [vmem:[%s1322_s7] ss:$0 sm:$0xff]  ;;  %v488_v58 = vld [vmem:[#allocation3 + $0x8] sm:$0xff]  ;;  %v467_v0 = vld [vmem:[#allocation14] sm:$0xff]  ;;  %p1110_p7 = scmp.ne.s32.totalorder %s800_s18, %s1109_s4  ;;  %p1115_p9 = scmp.lt.s32.totalorder %s1109_s4, %s1109_s4 }
  0x59   :  { %877 = vmatpush3.bf16.msra.mxu1 %v951_v7  ;;  %v487_v57 = vld [vmem:[#allocation3] sm:$0xff]  ;;  %v470_v3 = vld [vmem:[#allocation14 + $0x18] sm:$0xff]  ;;  %v468_v6 = vld [vmem:[#allocation14 + $0x8] sm:$0xff] }
  0x5a   :  { %871 = vmatpush3.bf16.msra.mxu0 %v950_v1  ;;  %878 = vmatprep.subr.bf16.mxu1 %v952_v8  ;;  %v489_v60 = vpack.c.bf16 %v488_v58, %v487_v57  ;;  %v469_v62 = vld [vmem:[#allocation14 + $0x10] sm:$0xff]  ;;  %p1116_p10 = por %p1115_p9, %p1114_p8 }
  0x5c   :  { %p1117_p11 = pnand %p1116_p10, %p1110_p7 }
  0x5d   :  { %873 = vmatmul.mubr.msk.bf16.vlgmr.msra.gmra.mxu0 %vm168_vm0, %v144_v9  ;;  %879 = vmatpush3.bf16.msra.mxu1 %v952_v8 }
  0x60   :  { %881 = vmatmul.mubr.msk.bf16.vlgmr.msra.gmra.mxu1 %vm168_vm0, %v144_v9  ;;  %v828_v9 = vld [vmem:[%s1318_s3] ss:$0 sm:$0xff] }
 0x11d   :  { %v874_v10 = vpop.f32.mrf.mxu0 }
 0x11e   :  { %v218_v17 = vadd.f32 %v874_v10, %v814_v11 }
 0x11f   :  { %v209_v12 = vpop.f32.mrf.mxu0 }
 0x120   :  { %v210_v13 = vadd.f32 %v814_v11, %v209_v12  ;;  %v882_v15 = vpop.f32.mrf.mxu1  ;;  %v306_v27 = vmin.f32 %v218_v17, 0.0  ;;  %v302_v49 = vadd.f32 1.0, %v218_v17  ;;  %vm298_vm4 = vcmp.gt.f32.partialorder %v218_v17, 0.0 }
 0x121   :  { %v875_v14 = vpop.f32.mrf.mxu0  ;;  %v290_v23 = vadd.f32 %v882_v15, %v819_v16 }
 0x122   :  { %v304_v18 = vmin.f32 %v210_v13, 0.0  ;;  %v221_v19 = vadd.f32 %v875_v14, %v814_v11  ;;  %v281_v21 = vpop.f32.mrf.mxu1  ;;  %v312_v36 = vmul.f32 1.442695, %v306_v27  ;;  %v300_v40 = vadd.f32 1.0, %v210_v13 }
 0x123   :  { %v212_v20 = vpop.f32.mrf.mxu0  ;;  %v282_v28 = vadd.f32 %v819_v16, %v281_v21  ;;  %vm296_vm1 = vcmp.gt.f32.partialorder %v210_v13, 0.0 }
 0x124   :  { %v307_v22 = vmin.f32 %v221_v19, 0.0  ;;  %v308_v24 = vmul.f32 1.442695, %v304_v18  ;;  %v213_v25 = vadd.f32 %v814_v11, %v212_v20  ;;  %v883_v26 = vpop.f32.mrf.mxu1  ;;  %v303_v46 = vadd.f32 1.0, %v221_v19 }
 0x125   :  { %v293_v29 = vadd.f32 %v883_v26, %v819_v16  ;;  %vm299_vm3 = vcmp.gt.f32.partialorder %v221_v19, 0.0 }
 0x126   :  { %v305_v30 = vmin.f32 %v213_v25, 0.0  ;;  %v284_v31 = vpop.f32.mrf.mxu1  ;;  %v314_v32 = vmul.f32 1.442695, %v307_v22  ;;  %957 = vpow2.f32 %v308_v24  ;;  %v301_v41 = vadd.f32 1.0, %v213_v25 }
 0x127   :  { %v323_v33 = vpack.c.bf16 %v293_v29, %v290_v23  ;;  %v285_v34 = vadd.f32 %v819_v16, %v284_v31  ;;  %vm297_vm2 = vcmp.gt.f32.partialorder %v213_v25, 0.0 }
 0x128   :  { %v310_v35 = vmul.f32 1.442695, %v305_v30 }
 0x129   :  { %v322_v37 = vpack.c.bf16 %v285_v34, %v282_v28  ;;  %890 = vmatprep.subr.bf16.mxu1 %v323_v33 }
 0x12a   :  { %959 = vpow2.f32 %v310_v35  ;;  %891 = vmatpush3.bf16.msra.mxu1 %v323_v33 }
 0x12b   :  { %961 = vpow2.f32 %v314_v32  ;;  %884 = vmatprep.subr.bf16.mxu0 %v322_v37  ;;  %904 = vmatprep.subr.mxu1 %v1150_v38 }
 0x12c   :  { %885 = vmatpush3.bf16.msra.mxu0 %v322_v37  ;;  %963 = vpow2.f32 %v312_v36 }
 0x12d   :  { %896 = vmatprep.subr.bf16.mxu0 %v1150_v38 }
 0x133   :  { %v958_v39 = vpop.eup %957 }
 0x134   :  { %v316_v44 = vsel %vm296_vm1, %v300_v40, %v958_v39 }
 0x137   :  { %v960_v42 = vpop.eup %959 }
 0x138   :  { %v962_v43 = vpop.eup %961  ;;  %v317_v45 = vsel %vm297_vm2, %v301_v41, %v960_v42 }
 0x139   :  { %v320_v47 = vpack.c.bf16 %v317_v45, %v316_v44  ;;  %v964_v48 = vpop.eup %963  ;;  %v319_v50 = vsel %vm299_vm3, %v303_v46, %v962_v43  ;;  %v955_v44 = vld [vmem:[#allocation12 + $0x8] sm:$0xff]   ;;  %v956_v45 = vld [vmem:[#allocation12] sm:$0xff]  }
 0x13a   :  { %v318_v51 = vsel %vm298_vm4, %v302_v49, %v964_v48 }
 0x13b   :  { %324 = vxpose.xlu0.c.b16.start.end [1/1] (short) (narrow) %v320_v47, 32  ;;  %v321_v52 = vpack.c.bf16 %v319_v50, %v318_v51  ;;  %v834_v51 = vld [vmem:[%s1324_s9] ss:$0 sm:$0xff] }
 0x140   :  { %396 = vxpose.xlu0.c.b16.start.end [1/1] (short) (narrow) %v321_v52, 32 }
 0x19d   :  { %v332_v53 = vpop.trf.xlu0 }
 0x19e   :  { %886 = vmatprep.mubr.msk.bf16.mxu0 %vm340_vm5, %v332_v53 }
 0x1a1   :  { %v333_v55 = vpop.trf.xlu0 }
 0x1a2   :  { %887 = vmatmul.mubr.msk.bf16.vlgmr.msra.gmra.mxu0 %vm340_vm5, %v333_v55 }
 0x1a3   :  { %897 = vmatpush3.bf16.msra.mxu0 %v953_v54  ;;  %900 = vmatprep.mubr.msk.bf16.mxu0 %vm1151_vm6, %v1150_v38 }
 0x1a4   :  { %898 = vmatprep.subr.bf16.mxu0 %v1150_v38 }
 0x1a5   :  { %v404_v59 = vpop.trf.xlu0 }
 0x1a6   :  { %892 = vmatprep.mubr.msk.bf16.mxu1 %vm340_vm5, %v404_v59 }
 0x1a7   :  { %899 = vmatpush3.bf16.msra.mxu0 %v954_v56 }
 0x1a8   :  { %915 = vmatprep.subr.mxu0 %v1150_v38 }
 0x1a9   :  { %v405_v61 = vpop.trf.xlu0 }
 0x1aa   :  { %893 = vmatmul.mubr.msk.bf16.vlgmr.msra.gmra.mxu1 %vm340_vm5, %v405_v61  ;;  %901 = vmatmul.mubr.msk.bf16.vlgmr.msra.gmra.mxu0 %vm168_vm0, %v489_v60 }
 0x1ab   :  { %912 = vmatprep.mubr.msk.f32.mxu1 %vm1151_vm6, %v1150_v38  ;;  %923 = vmatprep.mubr.msk.f32.mxu0 %vm1151_vm6, %v1150_v38 }
 0x262   :  { %v888_v63 = vpop.f32.mrf.mxu0 }
 0x263   :  { %v473_v1 = vmul.f32 %v888_v63, %v469_v62 }
 0x264   :  { %v381_v2 = vpop.f32.mrf.mxu0 }
 0x265   :  { %481 = vst.msk [vmem:[#allocation2 + $0x10] sm:$0xff] %vm168_vm0, %v473_v1  ;;  %v471_v4 = vmul.f32 %v467_v0, %v381_v2 }
 0x266   :  { %v889_v5 = vpop.f32.mrf.mxu0 }
 0x267   :  { %479 = vst.msk [vmem:[#allocation2] sm:$0xff] %vm168_vm0, %v471_v4  ;;  %v474_v7 = vmul.f32 %v889_v5, %v470_v3 }
 0x268   :  { %v384_v8 = vpop.f32.mrf.mxu0 }
 0x269   :  { %482 = vst.msk [vmem:[#allocation2 + $0x18] sm:$0xff] %vm168_vm0, %v474_v7  ;;  %v472_v10 = vmul.f32 %v468_v6, %v384_v8 }
 0x26a   :  { %v894_v11 = vpop.f32.mrf.mxu1  ;;  %v551_v12 = vpop.f32.mrf.mxu0 }
 0x26b   :  { %480 = vst.msk [vmem:[#allocation2 + $0x8] sm:$0xff] %vm168_vm0, %v472_v10  ;;  %v477_v13 = vmul.f32 %v894_v11, %v469_v62  ;;  %v552_v14 = vadd.f32 %v828_v9, %v551_v12 }
 0x26c   :  { %v452_v15 = vpop.f32.mrf.mxu1  ;;  %v902_v16 = vpop.f32.mrf.mxu0  ;;  %v572_v29 = vld [vmem:[#allocation2 + $0x10] sm:$0xff] }
 0x26d   :  { %485 = vst.msk [vmem:[#allocation2 + $0x30] sm:$0xff] %vm168_vm0, %v477_v13  ;;  %v562_v17 = vmin.f32 %v552_v14, 0.0  ;;  %v475_v18 = vmul.f32 %v467_v0, %v452_v15  ;;  %v560_v36 = vadd.f32 1.0, %v552_v14  ;;  %vm558_vm7 = vcmp.gt.f32.partialorder %v552_v14, 0.0 }
 0x26e   :  { %v895_v19 = vpop.f32.mrf.mxu1  ;;  %v554_v20 = vpop.f32.mrf.mxu0  ;;  %v570_v32 = vld [vmem:[#allocation2] sm:$0xff] }
 0x26f   :  { %v564_v21 = vmul.f32 1.442695, %v562_v17  ;;  %483 = vst.msk [vmem:[#allocation2 + $0x20] sm:$0xff] %vm168_vm0, %v475_v18  ;;  %v478_v22 = vmul.f32 %v895_v19, %v470_v3  ;;  %v555_v23 = vadd.f32 %v828_v9, %v554_v20 }
 0x270   :  { %v455_v24 = vpop.f32.mrf.mxu1  ;;  %v903_v25 = vpop.f32.mrf.mxu0  ;;  %v573_v26 = vld [vmem:[#allocation2 + $0x18] sm:$0xff] }
 0x271   :  { %965 = vpow2.f32 %v564_v21  ;;  %486 = vst.msk [vmem:[#allocation2 + $0x38] sm:$0xff] %vm168_vm0, %v478_v22  ;;  %v563_v27 = vmin.f32 %v555_v23, 0.0  ;;  %905 = vmatpush3.msra.mxu1 %v573_v26  ;;  %v476_v28 = vmul.f32 %v468_v6, %v455_v24  ;;  %v561_v41 = vadd.f32 1.0, %v555_v23 }
 0x272   :  { %906 = vmatprep.subr.mxu1 %v1150_v38  ;;  %v571_v31 = vld [vmem:[#allocation2 + $0x8] sm:$0xff]  ;;  %vm559_vm8 = vcmp.gt.f32.partialorder %v555_v23, 0.0 }
 0x273   :  { %v566_v30 = vmul.f32 1.442695, %v563_v27  ;;  %907 = vmatpush3.msra.mxu1 %v572_v29  ;;  %484 = vst.msk [vmem:[#allocation2 + $0x28] sm:$0xff] %vm168_vm0, %v476_v28 }
 0x274   :  { %908 = vmatprep.subr.mxu1 %v1150_v38  ;;  %v576_v34 = vld [vmem:[#allocation2 + $0x30] sm:$0xff] }
 0x275   :  { %967 = vpow2.f32 %v566_v30  ;;  %909 = vmatpush3.msra.mxu1 %v571_v31 }
 0x276   :  { %910 = vmatprep.subr.mxu1 %v1150_v38  ;;  %v574_v39 = vld [vmem:[#allocation2 + $0x20] sm:$0xff] }
 0x277   :  { %911 = vmatpush3.msra.mxu1 %v570_v32 }
 0x278   :  { %v577_v33 = vld [vmem:[#allocation2 + $0x38] sm:$0xff]  ;;  %926 = vmatprep.subr.bf16.mxu1 %v1150_v38 }
 0x279   :  { %916 = vmatpush3.msra.mxu0 %v577_v33 }
 0x27a   :  { %917 = vmatprep.subr.mxu0 %v1150_v38  ;;  %v575_v35 = vld [vmem:[#allocation2 + $0x28] sm:$0xff] }
 0x27b   :  { %918 = vmatpush3.msra.mxu0 %v576_v34 }
 0x27c   :  { %919 = vmatprep.subr.mxu0 %v1150_v38 }
 0x27d   :  { %920 = vmatpush3.msra.mxu0 %v575_v35 }
 0x27e   :  { %v966_v37 = vpop.eup %965  ;;  %921 = vmatprep.subr.mxu0 %v1150_v38 }
 0x27f   :  { %922 = vmatpush3.msra.mxu0 %v574_v39  ;;  %v568_v40 = vsel %vm558_vm7, %v560_v36, %v966_v37 }
 0x280   :  { %913 = vmatmul.mubr.msk.f32.vlgmr.msra.gmra.mxu1 %vm168_vm0, %v568_v40 }
 0x281   :  { %930 = vmatprep.mubr.msk.bf16.mxu1 %vm1151_vm6, %v1150_v38  ;;  %927 = vmatpush3.bf16.msra.mxu1 %v955_v44 }
 0x282   :  { %v968_v42 = vpop.eup %967  ;;  %928 = vmatprep.subr.bf16.mxu1 %v1150_v38 }
 0x283   :  { %v569_v43 = vsel %vm559_vm8, %v561_v41, %v968_v42 }
 0x284   :  { %924 = vmatmul.mubr.msk.f32.vlgmr.msra.gmra.mxu0 %vm168_vm0, %v569_v43 }
 0x285   :  { %929 = vmatpush3.bf16.msra.mxu1 %v956_v45 }
 0x340   :  { %v647_v46 = vpop.f32.mrf.mxu1 }
 0x342   :  { %v914_v47 = vpop.f32.mrf.mxu1 }
 0x344   :  { %v720_v48 = vpop.f32.mrf.mxu0 }
 0x345   :  { %v724_v49 = vpack.c.bf16 %v720_v48, %v647_v46 }
 0x346   :  { %v925_v50 = vpop.f32.mrf.mxu0 }
 0x347   :  { %931 = vmatmul.mubr.msk.bf16.vlgmr.msra.gmra.mxu1 %vm168_vm0, %v724_v49 }
 0x407   :  { %v785_v52 = vpop.f32.mrf.mxu1 }
 0x408   :  { %v786_v53 = vadd.f32 %v834_v51, %v785_v52 }
 0x409   :  { %v932_v54 = vpop.f32.mrf.mxu1 }
 0x40a   :  { %792 = vst.msk [vmem:[#allocation15] sm:$0xff] %vm168_vm0, %v786_v53 }
 0x40b   :  { %v788_v38 = vpop.f32.mrf.mxu1 }
 0x40c   :  { %v789_v55 = vadd.f32 %v834_v51, %v788_v38 }
 0x40d   :  { %v933_v56 = vpop.f32.mrf.mxu1 }
 0x40e   :  { %793 = vst.msk [vmem:[#allocation15 + $0x8] sm:$0xff] %vm168_vm0, %v789_v55 }
 0x40f   :  { %1120 = shalt.err (!%p1117_p11)
}
 0x410   :  { %805 = dma.vmem_to_hbm [thread:$0]  %s800_s18, 256, %s1326_s11, [#allocation5], %s1140_s20, %s1140_s20, %s1141_s21  }
 0x411   :  { %1137 = dma.done.wait [#allocation5], 256  }
 0x412   :  { %1138 = vsyncadd [#allocation5], 4294967040 }
 0x413   :  { %809 = vsyncpa [#allocation4], 1 }
 0x414   :  { %810 = vsyncpa [#allocation7], 1 }
 0x415   :  { %811 = vsyncpa [#allocation10], 1 }
 0x416   :  { %812 = vsyncpa [#allocation13], 1 }
 0x417   :  { %813 = vsyncpa [#allocation5], 1 }

</bundles_post_ra>
